<compile_context>
chip_gen: v6e
topology: v6e:2x2x1
jax: 0.10.0
libtpu: 0.0.40
codegen_flags: <defaults>
</compile_context>

<pallas_src>
import functools

import jax
import jax.numpy as jnp
import numpy as np
from jax.experimental import pallas as pl
from jax.experimental.pallas import tpu as pltpu


def _round_up(x, m):
    return ((x + m - 1) // m) * m


def _fused_forward_kernel(
    text_ref,                    # [TB, Dt]        f32
    img_ref,                     # [TB*C, thw]     f32 (one spatial chunk)
    wl_ref, bl_ref,              # language linear: [Dt, Lfp], [1, Lfp]
    sel_ref,                     # batch/channel regroup selector: [TB, TB*C]
    wvr_ref, bv_ref,             # vision linear (row-replicated): [TB*C, Vfp], [1, Vfp]
    wfl_ref, wfv_ref, bf_ref,    # fusion linear split: [Lfp, Fp], [Vfp, Fp], [1, Fp]
    wc_ref, bc_ref,              # classifier (lane-padded): [Fp, NCp], [1, NCp]
    pred_ref,                    # out: [TB, NCp]
    pooled_acc,                  # scratch: [TB*C, 1] f32 spatial-sum accumulator
    text_fused,                  # scratch: [TB, Fp]  f32  (text_feat @ Wf[:Lf])
    *,
    inv_hw,                      # 1 / (H*W)  (true spatial size, python float)
):
    j = pl.program_id(1)

    @pl.when(j == 0)
    def _init():
        pooled_acc[...] = jnp.zeros_like(pooled_acc)
        # Language branch + its fusion partial product: computed once per batch
        # tile, overlapping the image stream instead of lengthening finalize.
        t = jnp.maximum(
            jnp.dot(text_ref[...], wl_ref[...],
                    preferred_element_type=jnp.float32) + bl_ref[...], 0.0)
        text_fused[...] = jnp.dot(t, wfl_ref[...],
                                  preferred_element_type=jnp.float32)

    # Streamed spatial-sum accumulation (f32 in, f32 acc).  No chunk-wide cast;
    # the lane reduce is ~0.5 us/chunk and hidden under the chunk DMA.
    pooled_acc[...] += jnp.sum(img_ref[...], axis=-1, keepdims=True)

    @pl.when(j == pl.num_programs(1) - 1)
    def _finalize():
        # vision_module: global average pool (true H*W divisor) + linear + relu.
        # Rows of pooled_acc are (b, c)-interleaved; the regroup AND the vision
        # Linear happen in a single MXU matmul:
        #   sel[t, r]     = 1  iff  r // C == t
        #   wv_rows[r, :] = wv[r % C, :]
        mean_flat = pooled_acc[...] * inv_hw                        # [TB*C, 1]
        img_feat = jnp.maximum(
            jnp.dot(sel_ref[...], mean_flat * wvr_ref[...],
                    preferred_element_type=jnp.float32) + bv_ref[...], 0.0)

        # fusion(concat([text_feat, img_feat], 1)) as a split matmul; the text
        # half was precomputed at j == 0.  Dropout is identity (inference).
        fused = jnp.maximum(
            text_fused[...]
            + jnp.dot(img_feat, wfv_ref[...], preferred_element_type=jnp.float32)
            + bf_ref[...], 0.0)

        # classifier + softmax over the lane-padded class axis; padded columns
        # have zero weight and -1e30 bias, so they contribute ~0 to the softmax.
        logits = jnp.dot(fused, wc_ref[...],
                         preferred_element_type=jnp.float32) + bc_ref[...]
        m = jnp.max(logits, axis=-1, keepdims=True)
        e = jnp.exp(logits - m)
        denom = jnp.sum(e, axis=-1, keepdims=True)
        inv = pl.reciprocal(denom, approx=True)       # EUP slot
        inv = inv * (2.0 - denom * inv)               # one NR step -> f32 accuracy
        pred_ref[...] = e * inv


def language_and_vision_concat_forward(text, image_nchw, params, *, thw=None):
    """text: [B, Dt] f32; image_nchw: [B, C, H, W] f32. Returns (pred, loss=None)."""
    B, C, H, W = image_nchw.shape
    HW = H * W
    (wl, bl, wv, bv, wf_l, wf_v, bf, wc, bc) = params
    Dt = text.shape[1]
    Lf, Vf, F, NC = wl.shape[1], wv.shape[1], wf_l.shape[1], wc.shape[1]
    # Lane-pad hidden/class dims to 128: dense MXU tiles + unmasked stores.
    Lfp, Vfp, Fp, NCp = (_round_up(x, 128) for x in (Lf, Vf, F, NC))

    # ---- batch tile ----------------------------------------------------------
    # Sublane-aligned; when the batch allows it, guarantee >= 2 tiles so the
    # "parallel" grid axis can shard across v7x's two TensorCores.
    if B >= 16:
        TB = min(128, _round_up((B + 1) // 2, 8))
    else:
        TB = _round_up(max(B, 1), 8)
    B_pad = _round_up(B, TB)
    R = TB * C          # rows of the streamed 2-D image block (batch-major)
    # NOTE: this design assumes C is small (raw image channels); the sel /
    # wv_rows helpers are O(TB*C) and would not scale to trunk-feature C.

    # ---- spatial chunk -------------------------------------------------------
    # Pick the largest affordable thw first (double-buffered f32 image stream
    # budget ~24 MiB), then pad HW up to a multiple of it (at most one extra
    # chunk of zeros; the mean divisor is the true H*W).  Default x2 buffering
    # of the image block is what the 2x factor accounts for.
    HW_128 = _round_up(HW, 128)
    if thw is None:
        budget = 24 * 1024 * 1024
        thw = 128
        for cand in (8192, 4096, 2048, 1024, 512, 256, 128):
            if cand <= HW_128 and 2 * R * cand * 4 <= budget:
                thw = cand
                break
    assert thw % 128 == 0
    HW_pad = _round_up(HW, thw)

    # ---- pad parameters (zero padding keeps the math exact) ------------------
    wl_p = jnp.pad(wl, ((0, 0), (0, Lfp - Lf)))
    bl_p = jnp.pad(bl, ((0, 0), (0, Lfp - Lf)))
    wv_p = jnp.pad(wv, ((0, 0), (0, Vfp - Vf)))
    bv_p = jnp.pad(bv, ((0, 0), (0, Vfp - Vf)))
    wf_l_p = jnp.pad(wf_l, ((0, Lfp - Lf), (0, Fp - F)))
    wf_v_p = jnp.pad(wf_v, ((0, Vfp - Vf), (0, Fp - F)))
    bf_p = jnp.pad(bf, ((0, 0), (0, Fp - F)))
    wc_p = jnp.pad(wc, ((0, Fp - F), (0, NCp - NC)))
    bc_p = jnp.pad(bc, ((0, 0), (0, NCp - NC)), constant_values=-1e30)

    # Fold the vision Linear into a row-replicated weight + a host-built
    # regroup selector (both tiny, resident) so finalize needs no reshape.
    wv_rows = jnp.tile(wv_p, (TB, 1))                                    # [R, Vfp]
    sel = jnp.asarray(np.kron(np.eye(TB, dtype=np.float32),
                              np.ones((1, C), dtype=np.float32)))        # [TB, R]

    # ---- image: stream f32, no cast pass; pad only when actually needed -----
    img2d = image_nchw.reshape(B * C, HW)            # free reshape of NCHW
    pad_r, pad_c = B_pad * C - B * C, HW_pad - HW
    if pad_r or pad_c:
        img2d = jnp.pad(img2d, ((0, pad_r), (0, pad_c)))
    text_p = text if B_pad == B else jnp.pad(text, ((0, B_pad - B), (0, 0)))

    grid = (B_pad // TB, HW_pad // thw)   # (parallel batch, arbitrary HW chunks)

    def resident(shape):
        # Constant index_map: fetched once, stays resident across grid steps
        # (still double-buffered by default; counted in the VMEM budget).
        return pl.BlockSpec(shape, lambda i, j: (0, 0))

    kernel = functools.partial(_fused_forward_kernel, inv_hw=1.0 / float(HW))

    pred_padded = pl.pallas_call(
        kernel,
        out_shape=jax.ShapeDtypeStruct((B_pad, NCp), jnp.float32),
        grid_spec=pltpu.PrefetchScalarGridSpec(
            num_scalar_prefetch=0,
            grid=grid,
            in_specs=[
                pl.BlockSpec((TB, Dt), lambda i, j: (i, 0)),             # text
                pl.BlockSpec((R, thw), lambda i, j: (i, j)),             # image chunk
                resident((Dt, Lfp)), resident((1, Lfp)),                 # wl, bl
                resident((TB, R)),                                       # sel
                resident((R, Vfp)), resident((1, Vfp)),                  # wv_rows, bv
                resident((Lfp, Fp)), resident((Vfp, Fp)), resident((1, Fp)),  # fusion
                resident((Fp, NCp)), resident((1, NCp)),                 # wc, bc
            ],
            out_specs=pl.BlockSpec((TB, NCp), lambda i, j: (i, 0)),
            scratch_shapes=[
                pltpu.VMEM((R, 1), jnp.float32),      # pooled spatial sums
                pltpu.VMEM((TB, Fp), jnp.float32),    # text-branch fusion partial
            ],
        ),
        compiler_params=pltpu.CompilerParams(
            # Batch axis shards across TensorCores (v7x megacore); the spatial
            # reduction axis is last and marked arbitrary.
            dimension_semantics=("parallel", "arbitrary"),
            # ~24 MiB image stream + <2 MiB resident weights/scratch/output
            # fits comfortably; 48 MiB stays inside v7x's 64 MiB physical VMEM.
            vmem_limit_bytes=48 * 1024 * 1024,
        ),
    )(text_p, img2d, wl_p, bl_p, sel, wv_rows, bv_p,
      wf_l_p, wf_v_p, bf_p, wc_p, bc_p)

    pred = pred_padded[:B, :NC]
    loss = None  # label is None -> loss = None (matches the PyTorch module)
    return pred, loss


def _make_params(key, text_dim, chans, lang_dim, vis_dim, fusion_dim, num_classes):
    ks = jax.random.split(key, 9)

    def lin(k, fan_in, shape):
        bound = 1.0 / np.sqrt(fan_in)
        return jax.random.uniform(k, shape, jnp.float32, -bound, bound)

    wl = lin(ks[0], text_dim, (text_dim, lang_dim))
    bl = lin(ks[1], text_dim, (1, lang_dim))
    wv = lin(ks[2], chans, (chans, vis_dim))
    bv = lin(ks[3], chans, (1, vis_dim))
    wf = lin(ks[4], lang_dim + vis_dim, (lang_dim + vis_dim, fusion_dim))
    bf = lin(ks[5], lang_dim + vis_dim, (1, fusion_dim))
    wc = lin(ks[6], fusion_dim, (fusion_dim, num_classes))
    bc = lin(ks[7], fusion_dim, (1, num_classes))
    # split the fusion weight so the kernel avoids an explicit concat
    wf_l, wf_v = wf[:lang_dim], wf[lang_dim:]
    return (wl, bl, wv, bv, wf_l, wf_v, bf, wc, bc)


def _reference(text, image_nchw, params):
    # Pure f32 reference, matching the PyTorch forward (inference mode).
    (wl, bl, wv, bv, wf_l, wf_v, bf, wc, bc) = params
    tf_ = jax.nn.relu(text @ wl + bl)
    pooled = jnp.mean(image_nchw, axis=(2, 3))
    vf_ = jax.nn.relu(pooled @ wv + bv)
    combined = jnp.concatenate([tf_, vf_], axis=1)
    wf = jnp.concatenate([wf_l, wf_v], axis=0)
    fused = jax.nn.relu(combined @ wf + bf)
    logits = fused @ wc + bc
    return jax.nn.softmax(logits, axis=-1)


if __name__ == "__main__":
    B, C, H, W = 2, 4, 16, 16
    text_dim, lang_dim, vis_dim, fusion_dim, num_classes = 8, 16, 16, 32, 3

    key = jax.random.PRNGKey(0)
    k_text, k_img, k_par = jax.random.split(key, 3)
    text = jax.random.normal(k_text, (B, text_dim), jnp.float32)
    image = jax.random.normal(k_img, (B, C, H, W), jnp.float32)
    params = _make_params(k_par, text_dim, C, lang_dim, vis_dim, fusion_dim,
                          num_classes)

    # thw=128 forces two spatial chunks at this toy size so the grid-reduction
    # (init / accumulate / finalize) path is actually exercised.
    pred, loss = language_and_vision_concat_forward(text, image, params, thw=128)
    pred = jax.block_until_ready(pred)

    ref = _reference(text, image, params)
    np.testing.assert_allclose(np.asarray(pred), np.asarray(ref),
                               rtol=1e-5, atol=1e-5)
    assert pred.shape == (B, num_classes)
    assert loss is None
    print("KERNEL_OK")
</pallas_src>

<mosaic_0001>
module attributes {stable_mosaic.version = 11 : i64} {
  func.func @_fused_forward_kernel(%arg0: i32, %arg1: i32, %arg2: memref<8x8xf32, #tpu.memory_space<vmem>>, %arg3: memref<32x128xf32, #tpu.memory_space<vmem>>, %arg4: memref<8x128xf32, #tpu.memory_space<vmem>>, %arg5: memref<1x128xf32, #tpu.memory_space<vmem>>, %arg6: memref<8x32xf32, #tpu.memory_space<vmem>>, %arg7: memref<32x128xf32, #tpu.memory_space<vmem>>, %arg8: memref<1x128xf32, #tpu.memory_space<vmem>>, %arg9: memref<128x128xf32, #tpu.memory_space<vmem>>, %arg10: memref<128x128xf32, #tpu.memory_space<vmem>>, %arg11: memref<1x128xf32, #tpu.memory_space<vmem>>, %arg12: memref<128x128xf32, #tpu.memory_space<vmem>>, %arg13: memref<1x128xf32, #tpu.memory_space<vmem>>, %arg14: memref<8x128xf32, #tpu.memory_space<vmem>>, %arg15: memref<32x1xf32, #tpu.memory_space<vmem>>, %arg16: memref<8x128xf32, #tpu.memory_space<vmem>>) attributes {dimension_semantics = [#tpu.dimension_semantics<parallel>, #tpu.dimension_semantics<arbitrary>], iteration_bounds = array<i64: 1, 2>, scalar_prefetch = 0 : i64, scratch_operands = 2 : i64, tpu.core_type = #tpu.core_type<tc>, window_params = [{transform_indices = @transform_0, window_bounds = array<i64: 8, 8>}, {transform_indices = @transform_1, window_bounds = array<i64: 32, 128>}, {pipeline_mode = #tpu.pipeline_mode<synchronous>, transform_indices = @transform_2, window_bounds = array<i64: 8, 128>}, {pipeline_mode = #tpu.pipeline_mode<synchronous>, transform_indices = @transform_3, window_bounds = array<i64: 1, 128>}, {pipeline_mode = #tpu.pipeline_mode<synchronous>, transform_indices = @transform_4, window_bounds = array<i64: 8, 32>}, {pipeline_mode = #tpu.pipeline_mode<synchronous>, transform_indices = @transform_5, window_bounds = array<i64: 32, 128>}, {pipeline_mode = #tpu.pipeline_mode<synchronous>, transform_indices = @transform_6, window_bounds = array<i64: 1, 128>}, {pipeline_mode = #tpu.pipeline_mode<synchronous>, transform_indices = @transform_7, window_bounds = array<i64: 128, 128>}, {pipeline_mode = #tpu.pipeline_mode<synchronous>, transform_indices = @transform_8, window_bounds = array<i64: 128, 128>}, {pipeline_mode = #tpu.pipeline_mode<synchronous>, transform_indices = @transform_9, window_bounds = array<i64: 1, 128>}, {pipeline_mode = #tpu.pipeline_mode<synchronous>, transform_indices = @transform_10, window_bounds = array<i64: 128, 128>}, {pipeline_mode = #tpu.pipeline_mode<synchronous>, transform_indices = @transform_11, window_bounds = array<i64: 1, 128>}, {transform_indices = @transform_12, window_bounds = array<i64: 8, 128>}]} {
    %c0_i32 = arith.constant 0 : i32
    %0 = arith.cmpi eq, %arg1, %c0_i32 : i32
    %1 = arith.extui %0 : i1 to i32
    %c0_i32_0 = arith.constant 0 : i32
    %2 = arith.cmpi ne, %1, %c0_i32_0 : i32
    scf.if %2 {
      %cst_7 = arith.constant 0.000000e+00 : f32
      %12 = vector.broadcast %cst_7 : f32 to vector<32x1xf32>
      %c0_8 = arith.constant 0 : index
      %c0_9 = arith.constant 0 : index
      %13 = vector.load %arg15[%c0_8, %c0_9] : memref<32x1xf32, #tpu.memory_space<vmem>>, vector<32x1xf32>
      tpu.vector_store %arg15[%c0_8, %c0_9], %12 {strides = array<i32>} : memref<32x1xf32, #tpu.memory_space<vmem>>, vector<32x1xf32>,
      %c0_10 = arith.constant 0 : index
      %c0_11 = arith.constant 0 : index
      %14 = vector.load %arg2[%c0_10, %c0_11] : memref<8x8xf32, #tpu.memory_space<vmem>>, vector<8x8xf32>
      %c0_12 = arith.constant 0 : index
      %c0_13 = arith.constant 0 : index
      %15 = vector.load %arg4[%c0_12, %c0_13] : memref<8x128xf32, #tpu.memory_space<vmem>>, vector<8x128xf32>
      %cst_14 = arith.constant dense<0.000000e+00> : vector<8x128xf32>
      %16 = tpu.matmul %14, %15, %cst_14 {dimension_numbers = #tpu.dot_dimension_numbers<[1], [0], [0], [1], [0, 0, 1, 1], [], []>} : vector<8x8xf32>, vector<8x128xf32>, vector<8x128xf32> -> vector<8x128xf32>
      %c0_15 = arith.constant 0 : index
      %c0_16 = arith.constant 0 : index
      %17 = vector.load %arg5[%c0_15, %c0_16] : memref<1x128xf32, #tpu.memory_space<vmem>>, vector<1x128xf32>
      %18 = vector.broadcast %17 : vector<1x128xf32> to vector<8x128xf32>
      %19 = arith.addf %16, %18 : vector<8x128xf32>
      %cst_17 = arith.constant 0.000000e+00 : f32
      %20 = vector.broadcast %cst_17 : f32 to vector<8x128xf32>
      %21 = arith.maximumf %19, %20 : vector<8x128xf32>
      %c0_18 = arith.constant 0 : index
      %c0_19 = arith.constant 0 : index
      %22 = vector.load %arg9[%c0_18, %c0_19] : memref<128x128xf32, #tpu.memory_space<vmem>>, vector<128x128xf32>
      %cst_20 = arith.constant dense<0.000000e+00> : vector<8x128xf32>
      %23 = tpu.matmul %21, %22, %cst_20 {dimension_numbers = #tpu.dot_dimension_numbers<[1], [0], [0], [1], [0, 0, 1, 1], [], []>} : vector<8x128xf32>, vector<128x128xf32>, vector<8x128xf32> -> vector<8x128xf32>
      %c0_21 = arith.constant 0 : index
      %c0_22 = arith.constant 0 : index
      %24 = vector.load %arg16[%c0_21, %c0_22] : memref<8x128xf32, #tpu.memory_space<vmem>>, vector<8x128xf32>
      tpu.vector_store %arg16[%c0_21, %c0_22], %23 {strides = array<i32>} : memref<8x128xf32, #tpu.memory_space<vmem>>, vector<8x128xf32>,
    } else {
    }
    %c0 = arith.constant 0 : index
    %c0_1 = arith.constant 0 : index
    %3 = vector.load %arg15[%c0, %c0_1] : memref<32x1xf32, #tpu.memory_space<vmem>>, vector<32x1xf32>
    %c0_2 = arith.constant 0 : index
    %c0_3 = arith.constant 0 : index
    %4 = vector.load %arg3[%c0_2, %c0_3] : memref<32x128xf32, #tpu.memory_space<vmem>>, vector<32x128xf32>
    %cst = arith.constant dense<0.000000e+00> : vector<32xf32>
    %5 = vector.multi_reduction <add>, %4, %cst [1] : vector<32x128xf32> to vector<32xf32>
    %6 = vector.shape_cast %5 : vector<32xf32> to vector<32x1xf32>
    %7 = arith.addf %3, %6 : vector<32x1xf32>
    %c0_4 = arith.constant 0 : index
    %c0_5 = arith.constant 0 : index
    %8 = vector.load %arg15[%c0_4, %c0_5] : memref<32x1xf32, #tpu.memory_space<vmem>>, vector<32x1xf32>
    tpu.vector_store %arg15[%c0_4, %c0_5], %7 {strides = array<i32>} : memref<32x1xf32, #tpu.memory_space<vmem>>, vector<32x1xf32>,
    %c1_i32 = arith.constant 1 : i32
    %9 = arith.cmpi eq, %arg1, %c1_i32 : i32
    %10 = arith.extui %9 : i1 to i32
    %c0_i32_6 = arith.constant 0 : i32
    %11 = arith.cmpi ne, %10, %c0_i32_6 : i32
    scf.if %11 {
      %c0_7 = arith.constant 0 : index
      %c0_8 = arith.constant 0 : index
      %12 = vector.load %arg15[%c0_7, %c0_8] : memref<32x1xf32, #tpu.memory_space<vmem>>, vector<32x1xf32>
      %cst_9 = arith.constant 3.906250e-03 : f32
      %13 = vector.broadcast %cst_9 : f32 to vector<32x1xf32>
      %14 = arith.mulf %12, %13 : vector<32x1xf32>
      %c0_10 = arith.constant 0 : index
      %c0_11 = arith.constant 0 : index
      %15 = vector.load %arg6[%c0_10, %c0_11] : memref<8x32xf32, #tpu.memory_space<vmem>>, vector<8x32xf32>
      %c0_12 = arith.constant 0 : index
      %c0_13 = arith.constant 0 : index
      %16 = vector.load %arg7[%c0_12, %c0_13] : memref<32x128xf32, #tpu.memory_space<vmem>>, vector<32x128xf32>
      %17 = vector.broadcast %14 : vector<32x1xf32> to vector<32x128xf32>
      %18 = arith.mulf %17, %16 : vector<32x128xf32>
      %cst_14 = arith.constant dense<0.000000e+00> : vector<8x128xf32>
      %19 = tpu.matmul %15, %18, %cst_14 {dimension_numbers = #tpu.dot_dimension_numbers<[1], [0], [0], [1], [0, 0, 1, 1], [], []>} : vector<8x32xf32>, vector<32x128xf32>, vector<8x128xf32> -> vector<8x128xf32>
      %c0_15 = arith.constant 0 : index
      %c0_16 = arith.constant 0 : index
      %20 = vector.load %arg8[%c0_15, %c0_16] : memref<1x128xf32, #tpu.memory_space<vmem>>, vector<1x128xf32>
      %21 = vector.broadcast %20 : vector<1x128xf32> to vector<8x128xf32>
      %22 = arith.addf %19, %21 : vector<8x128xf32>
      %cst_17 = arith.constant 0.000000e+00 : f32
      %23 = vector.broadcast %cst_17 : f32 to vector<8x128xf32>
      %24 = arith.maximumf %22, %23 : vector<8x128xf32>
      %c0_18 = arith.constant 0 : index
      %c0_19 = arith.constant 0 : index
      %25 = vector.load %arg16[%c0_18, %c0_19] : memref<8x128xf32, #tpu.memory_space<vmem>>, vector<8x128xf32>
      %c0_20 = arith.constant 0 : index
      %c0_21 = arith.constant 0 : index
      %26 = vector.load %arg10[%c0_20, %c0_21] : memref<128x128xf32, #tpu.memory_space<vmem>>, vector<128x128xf32>
      %cst_22 = arith.constant dense<0.000000e+00> : vector<8x128xf32>
      %27 = tpu.matmul %24, %26, %cst_22 {dimension_numbers = #tpu.dot_dimension_numbers<[1], [0], [0], [1], [0, 0, 1, 1], [], []>} : vector<8x128xf32>, vector<128x128xf32>, vector<8x128xf32> -> vector<8x128xf32>
      %28 = arith.addf %25, %27 : vector<8x128xf32>
      %c0_23 = arith.constant 0 : index
      %c0_24 = arith.constant 0 : index
      %29 = vector.load %arg11[%c0_23, %c0_24] : memref<1x128xf32, #tpu.memory_space<vmem>>, vector<1x128xf32>
      %30 = vector.broadcast %29 : vector<1x128xf32> to vector<8x128xf32>
      %31 = arith.addf %28, %30 : vector<8x128xf32>
      %cst_25 = arith.constant 0.000000e+00 : f32
      %32 = vector.broadcast %cst_25 : f32 to vector<8x128xf32>
      %33 = arith.maximumf %31, %32 : vector<8x128xf32>
      %c0_26 = arith.constant 0 : index
      %c0_27 = arith.constant 0 : index
      %34 = vector.load %arg12[%c0_26, %c0_27] : memref<128x128xf32, #tpu.memory_space<vmem>>, vector<128x128xf32>
      %cst_28 = arith.constant dense<0.000000e+00> : vector<8x128xf32>
      %35 = tpu.matmul %33, %34, %cst_28 {dimension_numbers = #tpu.dot_dimension_numbers<[1], [0], [0], [1], [0, 0, 1, 1], [], []>} : vector<8x128xf32>, vector<128x128xf32>, vector<8x128xf32> -> vector<8x128xf32>
      %c0_29 = arith.constant 0 : index
      %c0_30 = arith.constant 0 : index
      %36 = vector.load %arg13[%c0_29, %c0_30] : memref<1x128xf32, #tpu.memory_space<vmem>>, vector<1x128xf32>
      %37 = vector.broadcast %36 : vector<1x128xf32> to vector<8x128xf32>
      %38 = arith.addf %35, %37 : vector<8x128xf32>
      %cst_31 = arith.constant dense<0xFF800000> : vector<8xf32>
      %39 = vector.multi_reduction <maximumf>, %38, %cst_31 [1] : vector<8x128xf32> to vector<8xf32>
      %40 = vector.shape_cast %39 : vector<8xf32> to vector<8x1xf32>
      %41 = vector.broadcast %40 : vector<8x1xf32> to vector<8x128xf32>
      %42 = arith.subf %38, %41 : vector<8x128xf32>
      %43 = math.exp %42 : vector<8x128xf32>
      %cst_32 = arith.constant dense<0.000000e+00> : vector<8xf32>
      %44 = vector.multi_reduction <add>, %43, %cst_32 [1] : vector<8x128xf32> to vector<8xf32>
      %45 = vector.shape_cast %44 : vector<8xf32> to vector<8x1xf32>
      %46 = tpu.reciprocal %45 {approx = true} : vector<8x1xf32> -> vector<8x1xf32>
      %47 = arith.mulf %45, %46 : vector<8x1xf32>
      %cst_33 = arith.constant 2.000000e+00 : f32
      %48 = vector.broadcast %cst_33 : f32 to vector<8x1xf32>
      %49 = arith.subf %48, %47 : vector<8x1xf32>
      %50 = arith.mulf %46, %49 : vector<8x1xf32>
      %51 = vector.broadcast %50 : vector<8x1xf32> to vector<8x128xf32>
      %52 = arith.mulf %43, %51 : vector<8x128xf32>
      %c0_34 = arith.constant 0 : index
      %c0_35 = arith.constant 0 : index
      %53 = vector.load %arg14[%c0_34, %c0_35] : memref<8x128xf32, #tpu.memory_space<vmem>>, vector<8x128xf32>
      tpu.vector_store %arg14[%c0_34, %c0_35], %52 {strides = array<i32>} : memref<8x128xf32, #tpu.memory_space<vmem>>, vector<8x128xf32>,
    } else {
    }
    return
  }
  func.func @transform_0(%arg0: i32, %arg1: i32) -> (i32, i32) {
    %c0_i32 = arith.constant 0 : i32
    %c0_i32_0 = arith.constant 0 : i32
    return %arg0, %c0_i32 : i32, i32
  }
  func.func @transform_1(%arg0: i32, %arg1: i32) -> (i32, i32) {
    %c0_i32 = arith.constant 0 : i32
    return %arg0, %arg1 : i32, i32
  }
  func.func @transform_2(%arg0: i32, %arg1: i32) -> (i32, i32) {
    %c0_i32 = arith.constant 0 : i32
    %c0_i32_0 = arith.constant 0 : i32
    %c0_i32_1 = arith.constant 0 : i32
    return %c0_i32, %c0_i32_0 : i32, i32
  }
  func.func @transform_3(%arg0: i32, %arg1: i32) -> (i32, i32) {
    %c0_i32 = arith.constant 0 : i32
    %c0_i32_0 = arith.constant 0 : i32
    %c0_i32_1 = arith.constant 0 : i32
    return %c0_i32, %c0_i32_0 : i32, i32
  }
  func.func @transform_4(%arg0: i32, %arg1: i32) -> (i32, i32) {
    %c0_i32 = arith.constant 0 : i32
    %c0_i32_0 = arith.constant 0 : i32
    %c0_i32_1 = arith.constant 0 : i32
    return %c0_i32, %c0_i32_0 : i32, i32
  }
  func.func @transform_5(%arg0: i32, %arg1: i32) -> (i32, i32) {
    %c0_i32 = arith.constant 0 : i32
    %c0_i32_0 = arith.constant 0 : i32
    %c0_i32_1 = arith.constant 0 : i32
    return %c0_i32, %c0_i32_0 : i32, i32
  }
  func.func @transform_6(%arg0: i32, %arg1: i32) -> (i32, i32) {
    %c0_i32 = arith.constant 0 : i32
    %c0_i32_0 = arith.constant 0 : i32
    %c0_i32_1 = arith.constant 0 : i32
    return %c0_i32, %c0_i32_0 : i32, i32
  }
  func.func @transform_7(%arg0: i32, %arg1: i32) -> (i32, i32) {
    %c0_i32 = arith.constant 0 : i32
    %c0_i32_0 = arith.constant 0 : i32
    %c0_i32_1 = arith.constant 0 : i32
    return %c0_i32, %c0_i32_0 : i32, i32
  }
  func.func @transform_8(%arg0: i32, %arg1: i32) -> (i32, i32) {
    %c0_i32 = arith.constant 0 : i32
    %c0_i32_0 = arith.constant 0 : i32
    %c0_i32_1 = arith.constant 0 : i32
    return %c0_i32, %c0_i32_0 : i32, i32
  }
  func.func @transform_9(%arg0: i32, %arg1: i32) -> (i32, i32) {
    %c0_i32 = arith.constant 0 : i32
    %c0_i32_0 = arith.constant 0 : i32
    %c0_i32_1 = arith.constant 0 : i32
    return %c0_i32, %c0_i32_0 : i32, i32
  }
  func.func @transform_10(%arg0: i32, %arg1: i32) -> (i32, i32) {
    %c0_i32 = arith.constant 0 : i32
    %c0_i32_0 = arith.constant 0 : i32
    %c0_i32_1 = arith.constant 0 : i32
    return %c0_i32, %c0_i32_0 : i32, i32
  }
  func.func @transform_11(%arg0: i32, %arg1: i32) -> (i32, i32) {
    %c0_i32 = arith.constant 0 : i32
    %c0_i32_0 = arith.constant 0 : i32
    %c0_i32_1 = arith.constant 0 : i32
    return %c0_i32, %c0_i32_0 : i32, i32
  }
  func.func @transform_12(%arg0: i32, %arg1: i32) -> (i32, i32) {
    %c0_i32 = arith.constant 0 : i32
    %c0_i32_0 = arith.constant 0 : i32
    return %arg0, %c0_i32 : i32, i32
  }
}

</mosaic_0001>

<bundles_post_ra>
// kernel: tpu_custom_call.1
= control target key start
LH: loop header
LB: loop body
LE: loop exit
PB: predicated region body
PF: predicated region fallthrough
CT: control target
= control target key end

     0   :  { %s2255_s0 = inlined_call_operand.hbm [shape: f32[8,8], index: 0, kind: input, shape index: {}]   ;;  %s2256_s1 = inlined_call_operand.hbm [shape: f32[32,256], index: 1, kind: input, shape index: {}]   ;;  %s2257_s2 = inlined_call_operand.hbm [shape: f32[8,128], index: 2, kind: input, shape index: {}]   ;;  %s2258_s3 = inlined_call_operand.vmem [shape: f32[1,128], index: 3, kind: input, shape index: {}]   ;;  %s2259_s4 = inlined_call_operand.hbm [shape: f32[8,32], index: 4, kind: input, shape index: {}]   ;;  %s2260_s5 = inlined_call_operand.hbm [shape: f32[32,128], index: 5, kind: input, shape index: {}]   ;;  %s2261_s6 = inlined_call_operand.vmem [shape: f32[1,128], index: 6, kind: input, shape index: {}]   ;;  %s2262_s7 = inlined_call_operand.hbm [shape: f32[128,128], index: 7, kind: input, shape index: {}]   ;;  %s2263_s8 = inlined_call_operand.hbm [shape: f32[128,128], index: 8, kind: input, shape index: {}]   ;;  %s2264_s9 = inlined_call_operand.vmem [shape: f32[1,128], index: 9, kind: input, shape index: {}]   ;;  %s2265_s10 = inlined_call_operand.hbm [shape: f32[128,128], index: 10, kind: input, shape index: {}]   ;;  %s2266_s11 = inlined_call_operand.vmem [shape: f32[1,128], index: 11, kind: input, shape index: {}]   ;;  %s2267_s12 = inlined_call_operand.hbm [shape: f32[8,128], index: 12, kind: output, shape index: {}]  }
   0x1   :  { %2272 = sst [smem:[#allocation26_spill]] %s2255_s0 }
   0x2   :  { %2273 = sst [smem:[#allocation27_spill]] %s2257_s2 }
   0x3   :  { %2274 = sst [smem:[#allocation28_spill]] %s2259_s4 }
   0x4   :  { %2275 = sst [smem:[#allocation29_spill]] %s2260_s5 }
   0x5   :  { %2276 = sst [smem:[#allocation30_spill]] %s2262_s7 }
   0x6   :  { %2277 = sst [smem:[#allocation31_spill]] %s2267_s12 }
   0x7   :  { %17 = vsyncpa [#allocation5], 0 }
   0x8   :  { %18 = vsyncpa [#allocation8], 0 }
   0x9   :  { %20 = vsyncpa [#allocation8 + $0x1], 0 }
   0xa   :  { %21 = vsyncpa [#allocation11], 0 }
   0xb   :  { %22 = vsyncpa [#allocation14], 0 }
   0xc   :  { %23 = vsyncpa [#allocation17], 0 }
   0xd   :  { %24 = vsyncpa [#allocation6], 0  ;;  %s1970_s21 = smov 0   ;;  %s1972_s22 = smov 0  }
   0xe   :  { %s1974_s23 = smov 0   ;;  %s1976_s24 = smov 0  }
   0xf   :  { %s1978_s25 = smov 0   ;;  %s1980_s26 = smov 0  }
  0x10 LB: > { %s1888_s27 = smov [#allocation9]   ;;  %s2001_s29 = sadd.s32 4294967295, %s1886_s26   ;;  %s1886_s26 = sphi %s1980_s26, %s30_s26   ;;  %s1882_s25 = sphi %s1978_s25, %s2308_s25   ;;  %s1878_s24 = sphi %s1976_s24, %s2307_s24   ;;  %s1874_s23 = sphi %s1974_s23, %s2306_s23   ;;  %s1870_s22 = sphi %s1972_s22, %s2305_s22   ;;  %s1866_s21 = sphi %s1970_s21, %s2304_s21  }
  0x11   : > { %s363_s28 = sshll.u32 %s1888_s27, 4  ;;  %p1220_p0 = scmp.ge.s32.totalorder %s1886_s26, 1  ;;  %s364_s28 = int_to_ptr.vmem [resolvable:$true] %s363_s28 }
  0x12   : > { %p2268_p1 = scmp.eq.s32.totalorder %s2001_s29, 0  ;;  %p337_p2 = scmp.lt.s32.totalorder %s1886_s26, 3 }
  0x13   : > { %s1889_s13 = smov [#allocation10]   ;;  %s1890_s16 = smov [#allocation13]  }
  0x14   : > { %p2006_p3 = pnand %p1220_p0, %p337_p2  ;;  %s377_s14 = sshll.u32 %s1889_s13, 4  ;;  %s378_s14 = int_to_ptr.vmem [resolvable:$true] %s377_s14 }
  0x15   : > { %s403_s17 = sshll.u32 %s1890_s16, 4  ;;  %s1589_s19 = scalar_lea.vmem %s364_s28, 128  ;;  %s2018_s17 = int_to_ptr.vmem [resolvable:$true] %s403_s17 }
  0x16   : > { %s2278_s30 = scalar_select %p2006_p3, 1, 0 }
  0x17   : > { %p1465_p4 = pneg %p2006_p3  ;;  %p1590_p7 = scmp.ne.s32.totalorder %s364_s28, %s1589_s19 }
  0x18   : > { %p1597_p10 = scmp.lt.s32.totalorder %s364_s28, %s364_s28  ;;  %p1598_p11 = scmp.lt.s32.totalorder %s1589_s19, %s1589_s19 }
  0x19   : > { %p2014_p5 = pnand %p1465_p4, %p2268_p1 }
  0x1a   : > { %p1599_p12 = por %p1598_p11, %p1597_p10 }
  0x1b   : > { %p2022_p6 = pneg %p2014_p5 }
  0x1d   : > { %p1592_p8 = pnand %p1590_p7, %p2022_p6 }
  0x1f   : > { %p1593_p9 = pneg %p1592_p8 }
  0x21   : > { %p1600_p13 = pnand %p1599_p12, %p1593_p9 }
  0x23   : > { %1603 = shalt.err (!%p1600_p13)
}
  0x24   : > { %s2281_s2 = sld [smem:[#allocation27_spill]]  ;;  %s1615_s13 = scalar_lea.vmem %s378_s14, 128 }
  0x25   : > { %p1616_p0 = scmp.ne.s32.totalorder %s378_s14, %s1615_s13  ;;  %p1623_p1 = scmp.lt.s32.totalorder %s378_s14, %s378_s14 }
  0x26   : > { %p1624_p7 = scmp.lt.s32.totalorder %s1615_s13, %s1615_s13 }
  0x27   : > { %p1618_p2 = pnand %p1616_p0, %p2022_p6 }
  0x28   : > { %p1625_p8 = por %p1624_p7, %p1623_p1 }
  0x29   : > { %p1619_p4 = pneg %p1618_p2 }
  0x2a   : > { %1471 = dma.hbm_to_vmem [thread:$0]  (!%p2014_p5), %s2281_s2, 128, %s364_s28, [#allocation8]  }
  0x2b   : > { %p1626_p3 = pnand %p1625_p8, %p1619_p4 }
  0x2d   : > { %1629 = shalt.err (!%p1626_p3)
}
  0x2e   : > { %s2282_s4 = sld [smem:[#allocation28_spill]]  ;;  %s1641_s28 = scalar_lea.vmem %s2018_s17, 2048 }
  0x2f   : > { %p1642_p9 = scmp.ne.s32.totalorder %s2018_s17, %s1641_s28  ;;  %p1649_p12 = scmp.lt.s32.totalorder %s2018_s17, %s2018_s17 }
  0x30   : > { %p1650_p1 = scmp.lt.s32.totalorder %s1641_s28, %s1641_s28 }
  0x31   : > { %p1644_p10 = pnand %p1642_p9, %p2022_p6 }
  0x32   : > { %p1651_p13 = por %p1650_p1, %p1649_p12 }
  0x33   : > { %p1645_p11 = pneg %p1644_p10 }
  0x34   : > { %1474 = dma.hbm_to_vmem [thread:$0]  (!%p2014_p5), %s2282_s4, 128, %s378_s14, [#allocation11]  }
  0x35   : > { %p1652_p3 = pnand %p1651_p13, %p1645_p11 }
  0x37   : > { %1655 = shalt.err (!%p1652_p3)
}
  0x38   : > { %s2270_s20 = smov 128   ;;  %s2271_s27 = smov 8  }
  0x39   : > { %s2283_s7 = sld [smem:[#allocation30_spill]]  ;;  %s1893_s16 = smov [#allocation4]  }
  0x3a   : > { %s352_s19 = sshll.u32 %s1893_s16, 4  ;;  %s1894_s28 = smov [#allocation12]   ;;  %s353_s19 = int_to_ptr.vmem [resolvable:$true] %s352_s19 }
  0x3b   : > { %s387_s2 = sshll.u32 %s1894_s28, 4  ;;  %s1667_s4 = scalar_lea.vmem %s353_s19, 128  ;;  %s388_s2 = int_to_ptr.vmem [resolvable:$true] %s387_s2 }
  0x3c   : > { %p1668_p0 = scmp.ne.s32.totalorder %s353_s19, %s1667_s4  ;;  %p1675_p7 = scmp.lt.s32.totalorder %s353_s19, %s353_s19 }
  0x3d   : > { %p1676_p8 = scmp.lt.s32.totalorder %s1667_s4, %s1667_s4 }
  0x3e   : > { %p1670_p2 = pnand %p1668_p0, %p2022_p6 }
  0x3f   : > { %1480 = dma.hbm_to_vmem [thread:$0]  (!%p2014_p5), %s2283_s7, 2048, %s2018_s17, [#allocation14], %s2270_s20, %s2270_s20, %s2271_s27  }
  0x40   : > { %p1671_p4 = pneg %p1670_p2  ;;  %p1677_p9 = por %p1676_p8, %p1675_p7 }
  0x42   : > { %p1678_p10 = pnand %p1677_p9, %p1671_p4 }
  0x44   : > { %1681 = shalt.err (!%p1678_p10)
}
  0x45   : > { %s2284_s0 = sld [smem:[#allocation26_spill]]  ;;  %s1693_s17 = scalar_lea.vmem %s388_s2, 512 }
  0x46   : > { %p1694_p11 = scmp.ne.s32.totalorder %s388_s2, %s1693_s17  ;;  %p1701_p13 = scmp.lt.s32.totalorder %s388_s2, %s388_s2 }
  0x47   : > { %p1702_p3 = scmp.lt.s32.totalorder %s1693_s17, %s1693_s17 }
  0x48   : > { %p1696_p12 = pnand %p1694_p11, %p2022_p6 }
  0x49   : > { %p1703_p0 = por %p1702_p3, %p1701_p13 }
  0x4a   : > { %p1697_p1 = pneg %p1696_p12 }
  0x4b   : > { %1468 = dma.hbm_to_vmem [thread:$0]  (!%p2014_p5), %s2284_s0, 128, %s353_s19, [#allocation5]  }
  0x4c   : > { %p1704_p2 = pnand %p1703_p0, %p1697_p1 }
  0x4e   : > { %1707 = shalt.err (!%p1704_p2)
}
  0x4f   : > { %s2285_s5 = sld [smem:[#allocation29_spill]]  ;;  %s1895_s13 = smov [#allocation15]  }
  0x50   : > { %s416_s16 = sshll.u32 %s1895_s13, 4  ;;  %s1896_s19 = smov [#allocation16]   ;;  %s417_s16 = int_to_ptr.vmem [resolvable:$true] %s416_s16 }
  0x51   : > { %s432_s28 = sshll.u32 %s1896_s19, 4  ;;  %s1719_s14 = scalar_lea.vmem %s417_s16, 2048  ;;  %s433_s28 = int_to_ptr.vmem [resolvable:$true] %s432_s28 }
  0x52   : > { %p1720_p4 = scmp.ne.s32.totalorder %s417_s16, %s1719_s14  ;;  %p1727_p9 = scmp.lt.s32.totalorder %s417_s16, %s417_s16 }
  0x53   : > { %p1728_p10 = scmp.lt.s32.totalorder %s1719_s14, %s1719_s14 }
  0x54   : > { %p1722_p7 = pnand %p1720_p4, %p2022_p6 }
  0x55   : > { %1477 = dma.hbm_to_vmem [thread:$0]  (!%p2014_p5), %s2285_s5, 512, %s388_s2, [#allocation11], %s2270_s20, %s2270_s20, %s2271_s27  }
  0x56   : > { %p1723_p8 = pneg %p1722_p7  ;;  %p1729_p11 = por %p1728_p10, %p1727_p9 }
  0x58   : > { %p1730_p12 = pnand %p1729_p11, %p1723_p8 }
  0x5a   : > { %1733 = shalt.err (!%p1730_p12)
}
  0x5b   : > { %1483 = dma.hbm_to_vmem [thread:$0]  (!%p2014_p5), %s2263_s8, 2048, %s417_s16, [#allocation14], %s2270_s20, %s2270_s20, %s2271_s27  }
  0x5c   : > { %s1745_s4 = scalar_lea.vmem %s433_s28, 2048  ;;  %p1753_p0 = scmp.lt.s32.totalorder %s433_s28, %s433_s28 }
  0x5d   : > { %p1746_p1 = scmp.ne.s32.totalorder %s433_s28, %s1745_s4  ;;  %p1754_p2 = scmp.lt.s32.totalorder %s1745_s4, %s1745_s4 }
  0x5f   : > { %p1748_p13 = pnand %p1746_p1, %p2022_p6  ;;  %p1755_p4 = por %p1754_p2, %p1753_p0 }
  0x61   : > { %p1749_p3 = pneg %p1748_p13 }
  0x63   : > { %p1756_p7 = pnand %p1755_p4, %p1749_p3 }
  0x65   : > { %1759 = shalt.err (!%p1756_p7)
}
  0x66   : > { %1486 = dma.hbm_to_vmem [thread:$0]  (!%p2014_p5), %s2265_s10, 2048, %s433_s28, [#allocation17], %s2270_s20, %s2270_s20, %s2271_s27  }
  0x67   : > { %s39_s15 = sadd.s32 1, %s1882_s25  ;;  %s77_s18 = sadd.s32 1, %s1874_s23 }
  0x68   : > { %p40_p6 = scmp.ge.s32.totalorder %s39_s15, 2  ;;  %p84_p8 = scmp.ne.s32.totalorder %s1874_s23, %s1870_s22 }
  0x69   : > { %p85_p9 = scmp.eq.s32.totalorder %s1886_s26, 0  ;;  %p90_p11 = scmp.ne.s32.totalorder %s1870_s22, %s1866_s21 }
  0x6a   : > { %s2310_s15 = smov (%p40_p6, %s39_s15), 0  ;;  %p1498_p12 = scmp.lt.s32.totalorder %s1886_s26, 2 }
  0x6b   : > { %p2099_p10 = por %p85_p9, %p84_p8  ;;  %s73_s19 = ssub.s32 %s1882_s25, %s2310_s15 }
  0x6c   : > { %p75_p1 = scmp.eq.s32.totalorder %s73_s19, 0  ;;  %p2287_p13 = scmp.eq.s32.totalorder %s2001_s29, 0 }
  0x6d   : > { %s449_s14 = sand.u32 1, %s1886_s26   ;;  %s451_s2 = sand.u32 1, %s1874_s23  }
  0x6e   : > { %p2110_p5 = por %p2287_p13, %p90_p11  ;;  %s1229_s4 = sshll.u32 %s451_s2, 5 }
  0x6f   : > { %s2117_s17 = scalar_select %p75_p1, %s1874_s23, %s77_s18  }
  0x70   : > { %s1230_s12 = sshll.u32 %s1882_s25, 7  ;;  %s453_s0 = scalar_lea.vmem [#allocation7], %s1229_s4 }
  0x71   : > { %s461_s27 = scalar_lea.hbm %s2256_s1, %s1230_s12  ;;  %s462_s21 = sshll.u32 %s453_s0, 4  ;;  %s463_s21 = int_to_ptr.vmem [resolvable:$true] %s462_s21 }
  0x72   : > { %p2125_p3 = pnand %p1498_p12, %p2099_p10  ;;  %s450_s5 = scalar_lea.sflag [#allocation8], %s449_s14 }
  0x73   : > { %s1773_s18 = scalar_lea.vmem %s463_s21, 512  ;;  %s1897_s2 = smov [#allocation7]  }
  0x74   : > { %p1762_p0 = pneg %p2125_p3  ;;  %p1774_p2 = scmp.ne.s32.totalorder %s463_s21, %s1773_s18 }
  0x75   : > { %s1778_s7 = sshll.u32 %s1897_s2, 4  ;;  %s1779_s7 = int_to_ptr.vmem [resolvable:$false] %s1778_s7 }
  0x76   : > { %p1776_p4 = pnand %p1774_p2, %p1762_p0  ;;  %s1780_s20 = scalar_lea.vmem %s1779_s7, 1024 }
  0x77   : > { %p1781_p6 = scmp.lt.s32.totalorder %s463_s21, %s1779_s7  ;;  %p1782_p8 = scmp.lt.s32.totalorder %s1780_s20, %s1773_s18 }
  0x78   : > { %p1777_p7 = pneg %p1776_p4 }
  0x79   : > { %p1783_p9 = por %p1782_p8, %p1781_p6 }
  0x7b   : > { %p1784_p11 = pnand %p1783_p9, %p1777_p7 }
  0x7d   : > { %1787 = shalt.err (!%p1784_p11)
}
  0x7e   : > { %s1898_s0 = smov 256   ;;  %s2290_s16 = smov 8  }
  0x7f   : > { %s2291_s14 = smov 128   ;;  %p2292_p10 = scmp.ne.s32.totalorder %s2278_s30, 0 }
  0x80   : > { %1490 = dma.hbm_to_vmem [thread:$0]  (!%p2125_p3), %s461_s27, 512, %s463_s21, %s450_s5, %s1898_s0, %s2291_s14, %s2290_s16  }
  0x81   : > { %474 = sbr.rel (%p2292_p10) target bundleno = 1772 (0x6ec), region = 68  ;;  %p2293_p12 = scmp.eq.s32.totalorder (!%p2292_p10), %s2001_s29, 0 }
  0x86   : > { %1837 = dma.done.wait (%p2293_p12), [#allocation5], 128   ;;  %p2294_p1 = pmov %p2293_p12 }
  0x87   : > { %s480_s7 = sand.u32 1, %s2001_s29   ;;  %s482_s4 = sand.u32 1, %s1870_s22  }
  0x88   : > { %1839 = vsyncadd (%p2294_p1), [#allocation5], 4294967168  ;;  %s1233_s12 = sshll.u32 %s482_s4, 5  ;;  %s481_s13 = scalar_lea.sflag [#allocation8], %s480_s7 }
  0x89   : > { %s2143_s19 = scalar_lea.vmem [#allocation7], %s1233_s12 }
  0x8a   : > { %1841 = dma.done.wait (%p2110_p5), %s481_s13, 512  }
  0x8b   : > { %1843 = vsyncadd (%p2110_p5), %s481_s13, 4294966784  ;;  %p2295_p13 = pmov %p2294_p1 }
  0x8c   : > { %p2296_p3 = pmov %p2294_p1 }
  0x8d   : > { %1845 = dma.done.wait (%p2295_p13), [#allocation8], 128  }
  0x8e   : > { %1847 = vsyncadd (%p2296_p3), [#allocation8], 4294967168  ;;  %p2297_p0 = pmov %p2294_p1 }
  0x90   : > { %1849 = dma.done.wait (%p2297_p0), [#allocation11], 640   ;;  %p2298_p2 = pmov %p2297_p0 }
  0x91   : > { %p2299_p4 = pmov %p2297_p0 }
  0x92   : > { %1851 = vsyncadd (%p2298_p2), [#allocation11], 4294966656 }
  0x93   : > { %1853 = dma.done.wait (%p2299_p4), [#allocation14], 4096   ;;  %p2300_p7 = pmov %p2297_p0 }
  0x94   : > { %p2301_p5 = pmov %p2297_p0 }
  0x95   : > { %1855 = vsyncadd (%p2300_p7), [#allocation14], 4294963200 }
  0x96   : > { %1857 = dma.done.wait (%p2301_p5), [#allocation17], 2048   ;;  %p2302_p6 = pmov %p2297_p0 }
  0x97   : > { %p1240_p8 = scmp.ne.s32.totalorder %s1878_s24, 0 }
  0x98   : > { %1859 = vsyncadd (%p2302_p6), [#allocation17], 4294965248 }
  0x99   : > { %548 = sbr.rel (%p1240_p8) target bundleno = 553 (0x229), region = 104 }
  0x9e   : > { %vm549_vm0 = vcmask 7168   ;;  %v555_v0 = vld [vmem:[#allocation9] sm:$0xff]  ;;  %v554_v1 = vld [vmem:[#allocation4] sm:$0xff]  ;;  %vm563_vm1 = vcmask 64512   ;;  %v1899_v2 = vmov 0.0   ;;  %vm1900_vm2 = vmmov 0  }
  0x9f   : > { %550 = vst.msk [vmem:[#allocation2] sm:$0xff] %vm549_vm0, %v1899_v2  ;;  %551 = vst.msk [vmem:[#allocation2 + $0x8] sm:$0xff] %vm549_vm0, %v1899_v2  ;;  %1310 = vmatprep.subr.mxu0 %v1899_v2  ;;  %1312 = vmatprep.mubr.msk.f32.mxu0 %vm1900_vm2, %v1899_v2  ;;  %v653_v3 = vld [vmem:[#allocation13 + $0x78] sm:$0xff]  ;;  %v652_v4 = vld [vmem:[#allocation13 + $0x70] sm:$0xff] }
  0xa0   : > { %552 = vst.msk [vmem:[#allocation2 + $0x10] sm:$0xff] %vm549_vm0, %v1899_v2  ;;  %553 = vst.msk [vmem:[#allocation2 + $0x18] sm:$0xff] %vm549_vm0, %v1899_v2  ;;  %1311 = vmatpush3.msra.mxu0 %v555_v0  ;;  %1315 = vmatprep.subr.mxu1 %v1899_v2  ;;  %v651_v5 = vld [vmem:[#allocation13 + $0x68] sm:$0xff]  ;;  %v650_v6 = vld [vmem:[#allocation13 + $0x60] sm:$0xff] }
  0xa1   : > { %1313 = vmatmul.mubr.msk.f32.vlgmr.msra.gmra.mxu0 %vm563_vm1, %v554_v1  ;;  %1316 = vmatpush3.msra.mxu1 %v653_v3  ;;  %v649_v7 = vld [vmem:[#allocation13 + $0x58] sm:$0xff]  ;;  %v648_v8 = vld [vmem:[#allocation13 + $0x50] sm:$0xff]  ;;  %v647_v9 = vld [vmem:[#allocation13 + $0x48] sm:$0xff] }
  0xa2   : > { %1317 = vmatprep.subr.mxu1 %v1899_v2  ;;  %1347 = vmatprep.mubr.msk.f32.mxu1 %vm1900_vm2, %v1899_v2  ;;  %v646_v10 = vld [vmem:[#allocation13 + $0x40] sm:$0xff]  ;;  %v645_v11 = vld [vmem:[#allocation13 + $0x38] sm:$0xff]  ;;  %v644_v12 = vld [vmem:[#allocation13 + $0x30] sm:$0xff] }
  0xa3   : > { %1318 = vmatpush3.msra.mxu1 %v652_v4  ;;  %v643_v13 = vld [vmem:[#allocation13 + $0x28] sm:$0xff]  ;;  %v642_v14 = vld [vmem:[#allocation13 + $0x20] sm:$0xff]  ;;  %v641_v15 = vld [vmem:[#allocation13 + $0x18] sm:$0xff] }
  0xa4   : > { %1319 = vmatprep.subr.mxu1 %v1899_v2  ;;  %v640_v16 = vld [vmem:[#allocation13 + $0x10] sm:$0xff]  ;;  %v639_v17 = vld [vmem:[#allocation13 + $0x8] sm:$0xff]  ;;  %v638_v18 = vld [vmem:[#allocation13] sm:$0xff] }
  0xa5   : > { %1320 = vmatpush3.msra.mxu1 %v651_v5  ;;  %v1241_v19 = vld [vmem:[%s2258_s3] ss:$0 sm:$0xff] }
  0xa6   : > { %1321 = vmatprep.subr.mxu1 %v1899_v2 }
  0xa7   : > { %1322 = vmatpush3.msra.mxu1 %v650_v6 }
  0xa8   : > { %1323 = vmatprep.subr.mxu1 %v1899_v2 }
  0xa9   : > { %1324 = vmatpush3.msra.mxu1 %v649_v7 }
  0xaa   : > { %1325 = vmatprep.subr.mxu1 %v1899_v2 }
  0xab   : > { %1326 = vmatpush3.msra.mxu1 %v648_v8 }
  0xac   : > { %1327 = vmatprep.subr.mxu1 %v1899_v2 }
  0xad   : > { %1328 = vmatpush3.msra.mxu1 %v647_v9 }
  0xae   : > { %1329 = vmatprep.subr.mxu1 %v1899_v2 }
  0xaf   : > { %1330 = vmatpush3.msra.mxu1 %v646_v10 }
  0xb0   : > { %1331 = vmatprep.subr.mxu1 %v1899_v2 }
  0xb1   : > { %1332 = vmatpush3.msra.mxu1 %v645_v11 }
  0xb2   : > { %1333 = vmatprep.subr.mxu1 %v1899_v2 }
  0xb3   : > { %1334 = vmatpush3.msra.mxu1 %v644_v12 }
  0xb4   : > { %1335 = vmatprep.subr.mxu1 %v1899_v2 }
  0xb5   : > { %1336 = vmatpush3.msra.mxu1 %v643_v13 }
  0xb6   : > { %1337 = vmatprep.subr.mxu1 %v1899_v2 }
  0xb7   : > { %1338 = vmatpush3.msra.mxu1 %v642_v14 }
  0xb8   : > { %1339 = vmatprep.subr.mxu1 %v1899_v2 }
  0xb9   : > { %1340 = vmatpush3.msra.mxu1 %v641_v15 }
  0xba   : > { %1341 = vmatprep.subr.mxu1 %v1899_v2 }
  0xbb   : > { %1342 = vmatpush3.msra.mxu1 %v640_v16 }
  0xbc   : > { %1343 = vmatprep.subr.mxu1 %v1899_v2 }
  0xbd   : > { %1344 = vmatpush3.msra.mxu1 %v639_v17 }
  0xbe   : > { %1345 = vmatprep.subr.mxu1 %v1899_v2 }
  0xbf   : > { %1346 = vmatpush3.msra.mxu1 %v638_v18 }
 0x161   : > { %v633_v20 = vpop.f32.mrf.mxu0 }
 0x162   : > { %v634_v21 = vadd.f32 %v1241_v19, %v633_v20 }
 0x163   : > { %v1314_v22 = vpop.f32.mrf.mxu0 }
 0x164   : > { %v637_v23 = vmax.f32 %v634_v21, 0.0 }
 0x166   : > { %1348 = vmatmul.mubr.f32.vlgmr.msra.gmra.mxu1 %v637_v23 }
 0x226   : > { %v720_v24 = vpop.f32.mrf.mxu1 }
 0x227   : > { %724 = vst [vmem:[#allocation3] sm:$0xff] %v720_v24 }
 0x228   : > { %v1349_v25 = vpop.f32.mrf.mxu1 }
 0x229 PF: > { %v731_v26 = vld [vmem:[%s2143_s19 + $0x10] sm:$0xff]  ;;  %v729_v27 = vld [vmem:[%s2143_s19] sm:$0xff]  ;;  %v732_v28 = vld [vmem:[%s2143_s19 + $0x18] sm:$0xff]  ;;  %vm745_vm3 = vcmask 7168   ;;  %p1243_p9 = scmp.ne.s32.totalorder %s1878_s24, 1 }
 0x22a   : > { %737 = vadd.xlane.f32.xlu1 %v731_v26  ;;  %733 = vadd.xlane.f32.xlu0 %v729_v27  ;;  %v730_v29 = vld [vmem:[%s2143_s19 + $0x8] sm:$0xff]  ;;  %v727_v30 = vld [vmem:[#allocation2 + $0x10] sm:$0xff]  ;;  %v725_v31 = vld [vmem:[#allocation2] sm:$0xff] }
 0x22b   : > { %v728_v36 = vld [vmem:[#allocation2 + $0x18] sm:$0xff]  ;;  %v726_v37 = vld [vmem:[#allocation2 + $0x8] sm:$0xff] }
 0x22e   : > { %739 = vadd.xlane.f32.xlu1 %v732_v28  ;;  %735 = vadd.xlane.f32.xlu0 %v730_v29 }
 0x2b3   : > { %v738_v32 = vpop.xlane.xlu1 %737  ;;  %v734_v33 = vpop.xlane.xlu0 %733 }
 0x2b4   : > { %v743_v34 = vadd.f32 %v738_v32, %v727_v30  ;;  %v741_v35 = vadd.f32 %v734_v33, %v725_v31 }
 0x2b6   : > { %748 = vst.msk [vmem:[#allocation2 + $0x10] sm:$0xff] %vm745_vm3, %v743_v34  ;;  %746 = vst.msk [vmem:[#allocation2] sm:$0xff] %vm745_vm3, %v741_v35  ;;  %753 = sbr.rel (%p1243_p9) target bundleno = 1751 (0x6d7), region = 108 }
 0x2b7   : > { %v740_v38 = vpop.xlane.xlu1 %739  ;;  %v736_v39 = vpop.xlane.xlu0 %735 }
 0x2b8   : > { %v744_v40 = vadd.f32 %v740_v38, %v728_v36  ;;  %v742_v41 = vadd.f32 %v736_v39, %v726_v37 }
 0x2ba   : > { %749 = vst.msk [vmem:[#allocation2 + $0x18] sm:$0xff] %vm745_vm3, %v744_v40  ;;  %747 = vst.msk [vmem:[#allocation2 + $0x8] sm:$0xff] %vm745_vm3, %v742_v41 }
 0x2bb   : > { %v1901_v45 = vmov 0   ;;  %v1902_v49 = vmov 0.0   ;;  %vm1903_vm4 = vmmov 0   ;;  %v889_v52 = vld [vmem:[#allocation15 + $0x78] sm:$0xff]  ;;  %v888_v53 = vld [vmem:[#allocation15 + $0x70] sm:$0xff]  ;;  %v887_v54 = vld [vmem:[#allocation15 + $0x68] sm:$0xff] }
 0x2bc   : > { %1573 = vset.pattern.permute.xlu1 %v1901_v45  ;;  %1572 = vset.pattern.permute.xlu0 %v1901_v45  ;;  %v886_v55 = vld [vmem:[#allocation15 + $0x60] sm:$0xff]  ;;  %v885_v56 = vld [vmem:[#allocation15 + $0x58] sm:$0xff]  ;;  %v884_v57 = vld [vmem:[#allocation15 + $0x50] sm:$0xff]  ;;  %vm798_vm5 = vcmask 261120  }
 0x2bd   : > { %v756_v44 = vld [vmem:[#allocation2 + $0x10] sm:$0xff]  ;;  %v754_v48 = vld [vmem:[#allocation2] sm:$0xff]  ;;  %1350 = vmatprep.subr.mxu0 %v1902_v49  ;;  %1361 = vmatprep.subr.mxu1 %v1902_v49  ;;  %v883_v58 = vld [vmem:[#allocation15 + $0x48] sm:$0xff] }
 0x2be   : > { %v760_v50 = vmul.f32 0.00390625, %v756_v44  ;;  %v758_v51 = vmul.f32 0.00390625, %v754_v48  ;;  %1358 = vmatprep.mubr.msk.f32.mxu0 %vm1903_vm4, %v1902_v49  ;;  %1393 = vmatprep.mubr.msk.f32.mxu1 %vm1903_vm4, %v1902_v49  ;;  %v882_v59 = vld [vmem:[#allocation15 + $0x40] sm:$0xff]  ;;  %v881_v60 = vld [vmem:[#allocation15 + $0x38] sm:$0xff]  ;;  %v880_v61 = vld [vmem:[#allocation15 + $0x30] sm:$0xff] }
 0x2bf   : > { %1362 = vmatpush3.msra.mxu1 %v889_v52  ;;  %v879_v62 = vld [vmem:[#allocation15 + $0x28] sm:$0xff]  ;;  %v878_v63 = vld [vmem:[#allocation15 + $0x20] sm:$0xff]  ;;  %v877_v0 = vld [vmem:[#allocation15 + $0x18] sm:$0xff] }
 0x2c0   : > { %1363 = vmatprep.subr.mxu1 %v1902_v49  ;;  %v766_v1 = vld [vmem:[#allocation12 + $0x18] sm:$0xff]  ;;  %v765_v5 = vld [vmem:[#allocation12 + $0x10] sm:$0xff]  ;;  %v764_v6 = vld [vmem:[#allocation12 + $0x8] sm:$0xff] }
 0x2c1   : > { %v757_v42 = vld [vmem:[#allocation2 + $0x18] sm:$0xff]  ;;  %v755_v43 = vld [vmem:[#allocation2 + $0x8] sm:$0xff]  ;;  %1364 = vmatpush3.msra.mxu1 %v888_v53  ;;  %v763_v9 = vld [vmem:[#allocation12] sm:$0xff] }
 0x2c2   : > { %v761_v46 = vmul.f32 0.00390625, %v757_v42  ;;  %v759_v47 = vmul.f32 0.00390625, %v755_v43  ;;  %1365 = vmatprep.subr.mxu1 %v1902_v49  ;;  %v762_v13 = vld [vmem:[#allocation10] sm:$0xff]  ;;  %v876_v14 = vld [vmem:[#allocation15 + $0x10] sm:$0xff]  ;;  %v875_v15 = vld [vmem:[#allocation15 + $0x8] sm:$0xff] }
 0x2c3   : > { %1366 = vmatpush3.msra.mxu1 %v887_v54  ;;  %v874_v16 = vld [vmem:[#allocation15] sm:$0xff]  ;;  %v985_v17 = vld [vmem:[#allocation16 + $0x78] sm:$0xff]  ;;  %v984_v18 = vld [vmem:[#allocation16 + $0x70] sm:$0xff] }
 0x2c4   : > { %784 = vperm.xlu0 %1572, %v761_v46   ;;  %774 = vperm.xlu1 %1573, %v759_v47   ;;  %v983_v19 = vld [vmem:[#allocation16 + $0x68] sm:$0xff]  ;;  %v982_v20 = vld [vmem:[#allocation16 + $0x60] sm:$0xff]  ;;  %v981_v21 = vld [vmem:[#allocation16 + $0x58] sm:$0xff] }
 0x2c5   : > { %1367 = vmatprep.subr.mxu1 %v1902_v49  ;;  %v980_v22 = vld [vmem:[#allocation16 + $0x50] sm:$0xff]  ;;  %v979_v23 = vld [vmem:[#allocation16 + $0x48] sm:$0xff]  ;;  %v978_v24 = vld [vmem:[#allocation16 + $0x40] sm:$0xff] }
 0x2c6   : > { %1368 = vmatpush3.msra.mxu1 %v886_v55  ;;  %v977_v25 = vld [vmem:[#allocation16 + $0x38] sm:$0xff]  ;;  %v976_v26 = vld [vmem:[#allocation16 + $0x30] sm:$0xff]  ;;  %v975_v27 = vld [vmem:[#allocation16 + $0x28] sm:$0xff] }
 0x2c7   : > { %1369 = vmatprep.subr.mxu1 %v1902_v49  ;;  %v974_v28 = vld [vmem:[#allocation16 + $0x20] sm:$0xff]  ;;  %v973_v34 = vld [vmem:[#allocation16 + $0x18] sm:$0xff]  ;;  %v972_v35 = vld [vmem:[#allocation16 + $0x10] sm:$0xff] }
 0x2c8   : > { %779 = vperm.xlu0 %1572, %v760_v50   ;;  %769 = vperm.xlu1 %1573, %v758_v51   ;;  %v1244_v29 = vld [vmem:[%s2261_s6] ss:$0 sm:$0xff]  ;;  %v971_v36 = vld [vmem:[#allocation16 + $0x8] sm:$0xff] }
 0x2c9   : > { %1370 = vmatpush3.msra.mxu1 %v885_v56  ;;  %v970_v37 = vld [vmem:[#allocation16] sm:$0xff] }
 0x2ca   : > { %1371 = vmatprep.subr.mxu1 %v1902_v49  ;;  %v873_v38 = vld [vmem:[#allocation3] sm:$0xff] }
 0x2cb   : > { %1372 = vmatpush3.msra.mxu1 %v884_v57  ;;  %v1246_v40 = vld [vmem:[%s2264_s9] ss:$0 sm:$0xff] }
 0x2cc   : > { %1373 = vmatprep.subr.mxu1 %v1902_v49  ;;  %v1247_v45 = vld [vmem:[%s2266_s11] ss:$0 sm:$0xff] }
 0x2cd   : > { %1374 = vmatpush3.msra.mxu1 %v883_v58 }
 0x2ce   : > { %1375 = vmatprep.subr.mxu1 %v1902_v49 }
 0x2cf   : > { %1376 = vmatpush3.msra.mxu1 %v882_v59 }
 0x2d0   : > { %1377 = vmatprep.subr.mxu1 %v1902_v49 }
 0x2d1   : > { %1378 = vmatpush3.msra.mxu1 %v881_v60 }
 0x2d2   : > { %1379 = vmatprep.subr.mxu1 %v1902_v49 }
 0x2d3   : > { %1380 = vmatpush3.msra.mxu1 %v880_v61 }
 0x2d4   : > { %1381 = vmatprep.subr.mxu1 %v1902_v49 }
 0x2d5   : > { %1382 = vmatpush3.msra.mxu1 %v879_v62 }
 0x2d6   : > { %1383 = vmatprep.subr.mxu1 %v1902_v49 }
 0x2d7   : > { %1384 = vmatpush3.msra.mxu1 %v878_v63 }
 0x2d8   : > { %1385 = vmatprep.subr.mxu1 %v1902_v49 }
 0x2d9   : > { %1386 = vmatpush3.msra.mxu1 %v877_v0 }
 0x2da   : > { %1387 = vmatprep.subr.mxu1 %v1902_v49 }
 0x2db   : > { %1388 = vmatpush3.msra.mxu1 %v876_v14 }
 0x2dc   : > { %1389 = vmatprep.subr.mxu1 %v1902_v49 }
 0x2dd   : > { %1390 = vmatpush3.msra.mxu1 %v875_v15 }
 0x2de   : > { %1391 = vmatprep.subr.mxu1 %v1902_v49 }
 0x2df   : > { %1392 = vmatpush3.msra.mxu1 %v874_v16 }
 0x33f   : > { %v785_v2 = vpop.permute.xlu0 %784  ;;  %v775_v3 = vpop.permute.xlu1 %774 }
 0x340   : > { %v790_v4 = vmul.f32 %v785_v2, %v766_v1  ;;  %v788_v11 = vmul.f32 %v775_v3, %v764_v6 }
 0x342   : > { %1351 = vmatpush3.msra.mxu0 %v790_v4 }
 0x343   : > { %v780_v7 = vpop.permute.xlu0 %779  ;;  %1352 = vmatprep.subr.mxu0 %v1902_v49  ;;  %v770_v10 = vpop.permute.xlu1 %769 }
 0x344   : > { %v789_v8 = vmul.f32 %v780_v7, %v765_v5  ;;  %v787_v12 = vmul.f32 %v770_v10, %v763_v9 }
 0x346   : > { %1353 = vmatpush3.msra.mxu0 %v789_v8 }
 0x347   : > { %1354 = vmatprep.subr.mxu0 %v1902_v49 }
 0x348   : > { %1355 = vmatpush3.msra.mxu0 %v788_v11 }
 0x349   : > { %1356 = vmatprep.subr.mxu0 %v1902_v49 }
 0x34a   : > { %1357 = vmatpush3.msra.mxu0 %v787_v12 }
 0x34b   : > { %1359 = vmatmul.mubr.msk.f32.vlgmr.msra.gmra.mxu0 %vm798_vm5, %v762_v13  ;;  %1396 = vmatprep.subr.mxu0 %v1902_v49 }
 0x34c   : > { %1428 = vmatprep.mubr.msk.f32.mxu0 %vm1903_vm4, %v1902_v49  ;;  %1397 = vmatpush3.msra.mxu0 %v985_v17 }
 0x34d   : > { %1398 = vmatprep.subr.mxu0 %v1902_v49 }
 0x34e   : > { %1399 = vmatpush3.msra.mxu0 %v984_v18 }
 0x34f   : > { %1400 = vmatprep.subr.mxu0 %v1902_v49 }
 0x350   : > { %1401 = vmatpush3.msra.mxu0 %v983_v19 }
 0x351   : > { %1402 = vmatprep.subr.mxu0 %v1902_v49 }
 0x352   : > { %1403 = vmatpush3.msra.mxu0 %v982_v20 }
 0x353   : > { %1404 = vmatprep.subr.mxu0 %v1902_v49 }
 0x354   : > { %1405 = vmatpush3.msra.mxu0 %v981_v21 }
 0x355   : > { %1406 = vmatprep.subr.mxu0 %v1902_v49 }
 0x356   : > { %1407 = vmatpush3.msra.mxu0 %v980_v22 }
 0x357   : > { %1408 = vmatprep.subr.mxu0 %v1902_v49 }
 0x358   : > { %1409 = vmatpush3.msra.mxu0 %v979_v23 }
 0x359   : > { %1410 = vmatprep.subr.mxu0 %v1902_v49 }
 0x35a   : > { %1411 = vmatpush3.msra.mxu0 %v978_v24 }
 0x35b   : > { %1412 = vmatprep.subr.mxu0 %v1902_v49 }
 0x35c   : > { %1413 = vmatpush3.msra.mxu0 %v977_v25 }
 0x35d   : > { %1414 = vmatprep.subr.mxu0 %v1902_v49 }
 0x35e   : > { %1415 = vmatpush3.msra.mxu0 %v976_v26 }
 0x35f   : > { %1416 = vmatprep.subr.mxu0 %v1902_v49 }
 0x360   : > { %1417 = vmatpush3.msra.mxu0 %v975_v27 }
 0x361   : > { %1418 = vmatprep.subr.mxu0 %v1902_v49 }
 0x362   : > { %1419 = vmatpush3.msra.mxu0 %v974_v28 }
 0x363   : > { %1420 = vmatprep.subr.mxu0 %v1902_v49 }
 0x364   : > { %1421 = vmatpush3.msra.mxu0 %v973_v34 }
 0x365   : > { %1422 = vmatprep.subr.mxu0 %v1902_v49 }
 0x366   : > { %1423 = vmatpush3.msra.mxu0 %v972_v35 }
 0x367   : > { %1424 = vmatprep.subr.mxu0 %v1902_v49 }
 0x368   : > { %1425 = vmatpush3.msra.mxu0 %v971_v36 }
 0x369   : > { %1426 = vmatprep.subr.mxu0 %v1902_v49 }
 0x36a   : > { %1427 = vmatpush3.msra.mxu0 %v970_v37 }
 0x40b   : > { %v868_v30 = vpop.f32.mrf.mxu0 }
 0x40c   : > { %v869_v31 = vadd.f32 %v1244_v29, %v868_v30 }
 0x40d   : > { %v1360_v32 = vpop.f32.mrf.mxu0 }
 0x40e   : > { %v872_v33 = vmax.f32 %v869_v31, 0.0 }
 0x410   : > { %1394 = vmatmul.mubr.f32.vlgmr.msra.gmra.mxu1 %v872_v33 }
 0x4d0   : > { %v956_v39 = vpop.f32.mrf.mxu1 }
 0x4d1   : > { %v960_v41 = vadd.f32 %v956_v39, %v873_v38 }
 0x4d2   : > { %v1395_v42 = vpop.f32.mrf.mxu1 }
 0x4d3   : > { %v968_v43 = vadd.f32 %v1246_v40, %v960_v41 }
 0x4d5   : > { %v969_v44 = vmax.f32 %v968_v43, 0.0 }
 0x4d7   : > { %1429 = vmatmul.mubr.f32.vlgmr.msra.gmra.mxu0 %v969_v44 }
 0x597   : > { %v1059_v46 = vpop.f32.mrf.mxu0 }
 0x598   : > { %v1060_v47 = vadd.f32 %v1247_v45, %v1059_v46 }
 0x599   : > { %v1430_v48 = vpop.f32.mrf.mxu0 }
 0x59a   : > { %1063 = vmax.xlane.f32.xlu0 %v1060_v47 }
 0x623   : > { %v1064_v49 = vpop.xlane.xlu0 %1063 }
 0x624   : > { %v1065_v50 = vsub.f32 %v1060_v47, %v1064_v49 }
 0x626   : > { %v1066_v51 = vmul.f32 1.442695, %v1065_v50 }
 0x628   : > { %1574 = vpow2.f32 %v1066_v51 }
 0x635   : > { %v1575_v52 = vpop.eup %1574 }
 0x636   : > { %1068 = vadd.xlane.f32.xlu1 %v1575_v52 }
 0x6bf   : > { %v1069_v53 = vpop.xlane.xlu1 %1068 }
 0x6c0   : > { %1576 = vrcp.f32 %v1069_v53 }
 0x6cd   : > { %v1577_v54 = vpop.eup %1576 }
 0x6ce   : > { %v1071_v55 = vmul.f32 %v1577_v54, %v1069_v53 }
 0x6d0   : > { %v1072_v56 = vsub.f32 2.0, %v1071_v55 }
 0x6d2   : > { %v1073_v57 = vmul.f32 %v1577_v54, %v1072_v56 }
 0x6d4   : > { %v1074_v58 = vmul.f32 %v1575_v52, %v1073_v57 }
 0x6d6   : > { %1075 = vst [vmem:[#allocation18] sm:$0xff] %v1074_v58 }
 0x6d7 PF: > { %p1506_p11 = scmp.eq.s32.totalorder %s2001_s29, 1  ;;  %s1904_s20 = smov [#allocation18]  }
 0x6d8   : > { %s1085_s0 = sshll.u32 %s1904_s20, 4  ;;  %s1086_s0 = int_to_ptr.vmem [resolvable:$true] %s1085_s0 }
 0x6d9   : > { %s1788_s16 = scalar_lea.vmem %s1086_s0, 128  ;;  %p1795_p13 = scmp.lt.s32.totalorder %s1086_s0, %s1086_s0 }
 0x6da   : > { %p1789_p10 = scmp.ne.s32.totalorder %s1086_s0, %s1788_s16  ;;  %p1796_p3 = scmp.lt.s32.totalorder %s1788_s16, %s1788_s16 }
 0x6dc   : > { %p1790_p12 = pnand %p1789_p10, %p1506_p11  ;;  %p1797_p0 = por %p1796_p3, %p1795_p13 }
 0x6de   : > { %p1791_p1 = pneg %p1790_p12 }
 0x6e0   : > { %p1798_p2 = pnand %p1797_p0, %p1791_p1 }
 0x6e2   : > { %1801 = shalt.err (!%p1798_p2)
}
 0x6e3   : > { %s2303_s4 = sld [smem:[#allocation31_spill]] }
 0x6e9   : > { %1462 = dma.vmem_to_hbm [thread:$0]  (%p1506_p11), %s1086_s0, 128, %s2303_s4, [#allocation6]  }
 0x6ea   : > { %1861 = dma.done.wait (%p1506_p11), [#allocation6], 128  }
 0x6eb   : > { %1863 = vsyncadd (%p1506_p11), [#allocation6], 4294967168 }
 0x6ec PF: > { %s30_s26 = sadd.s32 1, %s1886_s26   ;;  %s2304_s21 = smov %s1870_s22 }
 0x6ed   : > { %p27_p4 = scmp.ge.s32.totalorder %s30_s26, 4   ;;  %s2305_s22 = smov %s1874_s23 }
 0x6ee   : > { %s2306_s23 = smov %s2117_s17  ;;  %s2307_s24 = smov %s1882_s25 }
 0x6ef   : > { %s2308_s25 = smov %s2310_s15  ;;  %29 = sbr.rel (!%p27_p4) target bundleno = 16 (0x10), region = 144 }
 0x6f4   :  { %1098 = vsyncpa [#allocation5], 1 }
 0x6f5   :  { %1100 = vsyncpa [#allocation5 + $0x1], 1 }
 0x6f6   :  { %1101 = vsyncpa [#allocation8], 1 }
 0x6f7   :  { %1103 = vsyncpa [#allocation8 + $0x1], 1 }
 0x6f8   :  { %1104 = vsyncpa [#allocation11], 1 }
 0x6f9   :  { %1105 = vsyncpa [#allocation14], 1 }
 0x6fa   :  { %1106 = vsyncpa [#allocation17], 1 }
 0x6fb   :  { %1107 = vsyncpa [#allocation6], 1 }
 0x6fc   :  { %1109 = vsyncpa [#allocation6 + $0x1], 1 }

</bundles_post_ra>
